<compile_context>
chip_gen: v7x
topology: tpu7x:2x2x1
jax: 0.10.0
libtpu: 0.0.40
codegen_flags: <defaults>
</compile_context>

<pallas_src>
import math

import jax
import jax.numpy as jnp
from jax.experimental import pallas as pl
from jax.experimental.pallas import tpu as pltpu


_VMEM_BLOCK_BUDGET = 24 << 20   # max bytes of double-buffered blocks per step
_VMEM_LIMIT_BYTES = 32 << 20    # explicit scoped-VMEM limit (fits all chips)


def _rope_kernel(cos_ref, sin_ref, x_ref, o_ref):
    """RoPE on a (C, TILE_HW) tile using half-C cos/sin tiles."""
    half = x_ref.shape[0] // 2
    c = cos_ref[...]                 # (C/2, T)
    s = sin_ref[...]                 # (C/2, T)
    x1 = x_ref[:half, :]             # (C/2, T)
    x2 = x_ref[half:, :]             # (C/2, T)
    # out = cos * x + sin * rotate_half(x),  rotate_half(x) = [-x2, x1]
    o_ref[:half, :] = (c * x1 - s * x2).astype(o_ref.dtype)
    o_ref[half:, :] = (c * x2 + s * x1).astype(o_ref.dtype)


def _pick_tile_hw(hw_pad, C, itemsize, budget=_VMEM_BLOCK_BUDGET):
    """Largest 128-multiple divisor of hw_pad whose double-buffered per-step
    working set (C/2 cos + C/2 sin + C x + C out rows) fits `budget` bytes."""
    per_lane = 6 * C * itemsize              # 2 * (C/2 + C/2 + C + C)
    max_tile = max(128, (budget // per_lane) // 128 * 128)
    if hw_pad <= max_tile:
        return hw_pad                        # whole (padded) HW in one block
    best, cand = 128, 128
    while cand <= max_tile:
        if hw_pad % cand == 0:
            best = cand
        cand += 128
    return best


def rotary_pos_embed(x, cos, sin):
    """Apply rotary positional embedding.

    x   : (B, C, H, W)
    cos : (1, C, H, W)  module buffer; halves along C must be identical
    sin : (1, C, H, W)  module buffer; halves along C must be identical
    """
    B, C, H, W = x.shape
    assert C % 2 == 0, "rotate-half RoPE requires an even channel count"
    half = C // 2
    HW = H * W
    itemsize = jnp.dtype(x.dtype).itemsize

    hw_pad = -(-HW // 128) * 128             # round HW up to a lane multiple

    x_f = x.reshape(B, C, HW)
    cos_f = cos.reshape(C, HW)
    sin_f = sin.reshape(C, HW)
    if half % 8 != 0:
        # Tiny C: a half-C block over the full buffer would violate the (8,128)
        # block constraint, so materialize the half slice (negligible traffic
        # at small C).  For half % 8 == 0 the BlockSpec below reads block 0 of
        # the full buffer directly -- no slice, no extra HBM traffic.
        cos_f = cos_f[:half]
        sin_f = sin_f[:half]

    if hw_pad != HW:
        pad = hw_pad - HW
        x_f = jnp.pad(x_f, ((0, 0), (0, 0), (0, pad)))
        cos_f = jnp.pad(cos_f, ((0, 0), (0, pad)))
        sin_f = jnp.pad(sin_f, ((0, 0), (0, pad)))

    tile = _pick_tile_hw(hw_pad, C, itemsize)
    n_hw = hw_pad // tile

    cost = pl.CostEstimate(
        flops=3 * B * C * HW,
        transcendentals=0,
        bytes_accessed=(2 * B * C * HW + C * HW) * itemsize,
    )

    out = pl.pallas_call(
        _rope_kernel,
        out_shape=jax.ShapeDtypeStruct((B, C, hw_pad), x.dtype),
        # Batch is the innermost (fastest-varying) grid axis: cos/sin block
        # indices depend only on the HW-tile index, so they stay resident in
        # VMEM across all B steps of a tile (no re-DMA).
        grid=(n_hw, B),
        in_specs=[
            pl.BlockSpec((half, tile), lambda hw, b: (0, hw)),        # cos (first C/2 rows)
            pl.BlockSpec((half, tile), lambda hw, b: (0, hw)),        # sin (first C/2 rows)
            pl.BlockSpec((None, C, tile), lambda hw, b: (b, 0, hw)),  # x, batch squeezed
        ],
        out_specs=pl.BlockSpec((None, C, tile), lambda hw, b: (b, 0, hw)),
        compiler_params=pltpu.CompilerParams(
            dimension_semantics=("parallel", "parallel"),
            vmem_limit_bytes=_VMEM_LIMIT_BYTES,
        ),
        cost_estimate=cost,
    )(cos_f, sin_f, x_f)

    if hw_pad != HW:
        out = out[:, :, :HW]
    return out.reshape(B, C, H, W)


def make_rope_buffers(channels, spatial_size, dtype=jnp.float32):
    """Deterministic cos/sin buffers, matching the PyTorch __init__ exactly."""
    spatial_dims = len(spatial_size)
    freqs = jnp.exp(
        jnp.arange(0, channels, 2, dtype=dtype) * (-math.log(10000.0) / channels)
    )  # (channels // 2,)
    theta = jnp.zeros((1,), dtype=dtype)
    for dim, size in enumerate(spatial_size):
        p_size = [size if j == dim else 1 for j in range(spatial_dims)]
        pos = jnp.arange(size, dtype=dtype).reshape(1, 1, *p_size)
        omega = freqs.reshape(1, -1, *([1] * spatial_dims))
        theta = theta + omega * pos
    theta = jnp.concatenate([theta, theta], axis=1)  # (1, channels, *spatial_size)
    return jnp.cos(theta), jnp.sin(theta)


def _reference(x, cos, sin):
    d = x.shape[1]
    x1, x2 = x[:, : d // 2, ...], x[:, d // 2:, ...]
    x_half = jnp.concatenate([-x2, x1], axis=1)
    return cos * x + sin * x_half


if __name__ == "__main__":
    B, C, H, W = 2, 4, 16, 16
    key = jax.random.PRNGKey(0)
    x = jax.random.normal(key, (B, C, H, W), dtype=jnp.float32)

    cos, sin = make_rope_buffers(C, (H, W))

    out = rotary_pos_embed(x, cos, sin)
    out = jax.block_until_ready(out)

    ref = _reference(x, cos, sin)
    assert out.shape == (B, C, H, W)
    assert out.dtype == x.dtype
    assert jnp.allclose(out, ref, atol=1e-5, rtol=1e-5), "mismatch vs reference"

    print("KERNEL_OK")
</pallas_src>

<mosaic_0001>
module attributes {stable_mosaic.version = 11 : i64} {
  func.func @_rope_kernel(%arg0: i32, %arg1: i32, %arg2: memref<2x256xf32, #tpu.memory_space<vmem>>, %arg3: memref<2x256xf32, #tpu.memory_space<vmem>>, %arg4: memref<1x4x256xf32, #tpu.memory_space<vmem>>, %arg5: memref<1x4x256xf32, #tpu.memory_space<vmem>>) attributes {dimension_semantics = [#tpu.dimension_semantics<parallel>, #tpu.dimension_semantics<parallel>], iteration_bounds = array<i64: 1, 2>, scalar_prefetch = 0 : i64, scratch_operands = 0 : i64, tpu.core_type = #tpu.core_type<tc>, window_params = [{transform_indices = @transform_0, window_bounds = array<i64: 2, 256>}, {transform_indices = @transform_1, window_bounds = array<i64: 2, 256>}, {transform_indices = @transform_2, window_bounds = array<i64: 1, 4, 256>}, {transform_indices = @transform_3, window_bounds = array<i64: 1, 4, 256>}]} {
    %c0 = arith.constant 0 : index
    %c0_0 = arith.constant 0 : index
    %0 = vector.load %arg2[%c0, %c0_0] : memref<2x256xf32, #tpu.memory_space<vmem>>, vector<2x256xf32>
    %c0_1 = arith.constant 0 : index
    %c0_2 = arith.constant 0 : index
    %1 = vector.load %arg3[%c0_1, %c0_2] : memref<2x256xf32, #tpu.memory_space<vmem>>, vector<2x256xf32>
    %c0_3 = arith.constant 0 : index
    %c0_4 = arith.constant 0 : index
    %c0_5 = arith.constant 0 : index
    %2 = vector.load %arg4[%c0_3, %c0_4, %c0_5] : memref<1x4x256xf32, #tpu.memory_space<vmem>>, vector<1x2x256xf32>
    %3 = vector.shape_cast %2 : vector<1x2x256xf32> to vector<2x256xf32>
    %c0_6 = arith.constant 0 : index
    %c2 = arith.constant 2 : index
    %c0_7 = arith.constant 0 : index
    %4 = vector.load %arg4[%c0_6, %c2, %c0_7] : memref<1x4x256xf32, #tpu.memory_space<vmem>>, vector<1x2x256xf32>
    %5 = vector.shape_cast %4 : vector<1x2x256xf32> to vector<2x256xf32>
    %6 = arith.mulf %0, %3 : vector<2x256xf32>
    %7 = arith.mulf %1, %5 : vector<2x256xf32>
    %8 = arith.subf %6, %7 : vector<2x256xf32>
    %c0_8 = arith.constant 0 : index
    %c0_9 = arith.constant 0 : index
    %c0_10 = arith.constant 0 : index
    %9 = vector.load %arg5[%c0_8, %c0_9, %c0_10] : memref<1x4x256xf32, #tpu.memory_space<vmem>>, vector<1x2x256xf32>
    %10 = vector.shape_cast %9 : vector<1x2x256xf32> to vector<2x256xf32>
    %11 = vector.shape_cast %8 : vector<2x256xf32> to vector<1x2x256xf32>
    tpu.vector_store %arg5[%c0_8, %c0_9, %c0_10], %11 {strides = array<i32>} : memref<1x4x256xf32, #tpu.memory_space<vmem>>, vector<1x2x256xf32>,
    %12 = arith.mulf %0, %5 : vector<2x256xf32>
    %13 = arith.mulf %1, %3 : vector<2x256xf32>
    %14 = arith.addf %12, %13 : vector<2x256xf32>
    %c0_11 = arith.constant 0 : index
    %c2_12 = arith.constant 2 : index
    %c0_13 = arith.constant 0 : index
    %15 = vector.load %arg5[%c0_11, %c2_12, %c0_13] : memref<1x4x256xf32, #tpu.memory_space<vmem>>, vector<1x2x256xf32>
    %16 = vector.shape_cast %15 : vector<1x2x256xf32> to vector<2x256xf32>
    %17 = vector.shape_cast %14 : vector<2x256xf32> to vector<1x2x256xf32>
    tpu.vector_store %arg5[%c0_11, %c2_12, %c0_13], %17 {strides = array<i32>} : memref<1x4x256xf32, #tpu.memory_space<vmem>>, vector<1x2x256xf32>,
    return
  }
  func.func @transform_0(%arg0: i32, %arg1: i32) -> (i32, i32) {
    %c0_i32 = arith.constant 0 : i32
    %c0_i32_0 = arith.constant 0 : i32
    return %c0_i32, %arg0 : i32, i32
  }
  func.func @transform_1(%arg0: i32, %arg1: i32) -> (i32, i32) {
    %c0_i32 = arith.constant 0 : i32
    %c0_i32_0 = arith.constant 0 : i32
    return %c0_i32, %arg0 : i32, i32
  }
  func.func @transform_2(%arg0: i32, %arg1: i32) -> (i32, i32, i32) {
    %c0_i32 = arith.constant 0 : i32
    %c0_i32_0 = arith.constant 0 : i32
    return %arg1, %c0_i32, %arg0 : i32, i32, i32
  }
  func.func @transform_3(%arg0: i32, %arg1: i32) -> (i32, i32, i32) {
    %c0_i32 = arith.constant 0 : i32
    %c0_i32_0 = arith.constant 0 : i32
    return %arg1, %c0_i32, %arg0 : i32, i32, i32
  }
}

</mosaic_0001>

<bundles_post_ra>
// kernel: tpu_custom_call.1
= control target key start
LH: loop header
LB: loop body
LE: loop exit
PB: predicated region body
PF: predicated region fallthrough
CT: control target
= control target key end

     0   :  { %8 = vsyncpa [#allocation3], 0  ;;  %s970_s0 = inlined_call_operand.hbm [shape: f32[2,256], index: 0, kind: input, shape index: {}]   ;;  %s971_s1 = inlined_call_operand.hbm [shape: f32[2,256], index: 1, kind: input, shape index: {}]   ;;  %s972_s2 = inlined_call_operand.hbm [shape: f32[2,4,256], index: 2, kind: input, shape index: {}]   ;;  %s973_s3 = inlined_call_operand.hbm [shape: f32[2,4,256], index: 3, kind: output, shape index: {}]  }
   0x1   :  { %9 = vsyncpa [#allocation6], 0 }
   0x2   :  { %10 = vsyncpa [#allocation4], 0 }
   0x3   :  { %12 = vsyncpa [#allocation4 + $0x1], 0  ;;  %s732_s12 = smov 0   ;;  %s734_s13 = smov 0  }
   0x4   :  { %s736_s14 = smov 0   ;;  %s738_s15 = smov 0  }
   0x5   :  { %s740_s16 = smov 0   ;;  %s742_s17 = smov 0  }
   0x6 LB: > { %s763_s18 = sadd.s32 4294967295, %s706_s17   ;;  %s423_s19 = sadd.s32 4294967294, %s706_s17   ;;  %s706_s17 = sphi %s742_s17, %s18_s17   ;;  %s702_s16 = sphi %s740_s16, %s996_s16   ;;  %s698_s15 = sphi %s738_s15, %s995_s15   ;;  %s694_s14 = sphi %s736_s14, %s994_s14   ;;  %s690_s13 = sphi %s734_s13, %s993_s13   ;;  %s686_s12 = sphi %s732_s12, %s992_s12  }
   0x7   : > { %p104_p0 = scmp.ne.s32.totalorder %s690_s13, %s686_s12  ;;  %p974_p1 = scmp.eq.s32.totalorder %s763_s18, 0 }
   0x8   : > { %p136_p3 = scmp.eq.s32.totalorder %s423_s19, 1  ;;  %p424_p5 = scmp.ge.s32.totalorder %s706_s17, 1 }
   0x9   : > { %p772_p4 = por %p974_p1, %p104_p0  ;;  %p143_p7 = scmp.lt.s32.totalorder %s706_s17, 3 }
   0xa   : > { %p777_p6 = por %p136_p3, %p104_p0  ;;  %s708_s23 = smov [#allocation2]  }
   0xb   : > { %s977_s20 = scalar_select %p772_p4, 1, 0 }
   0xc   : > { %s978_s21 = scalar_select %p777_p6, 1, 0 }
   0xd   : > { %p782_p8 = pnand %p424_p5, %p143_p7  ;;  %s159_s24 = sshll.u32 %s708_s23, 4  ;;  %s160_s24 = int_to_ptr.vmem [resolvable:$true] %s159_s24 }
   0xe   : > { %s709_s25 = smov [#allocation5]   ;;  %s530_s30 = scalar_lea.hbm %s970_s0, 64 }
   0xf   : > { %s979_s22 = scalar_select %p782_p8, 1, 0 }
  0x10   : > { %p459_p10 = pneg %p782_p8  ;;  %s173_s26 = sshll.u32 %s709_s25, 4  ;;  %s795_s26 = int_to_ptr.vmem [resolvable:$true] %s173_s26 }
  0x11   : > { %p531_p12 = scmp.ne.s32.totalorder %s970_s0, %s530_s30  ;;  %p537_p5 = scmp.lt.u32.totalorder %s530_s30, %s970_s0 }
  0x12   : > { %p791_p11 = pnand %p459_p10, %p974_p1 }
  0x14   : > { %p532_p13 = pneg %p791_p11 }
  0x16   : > { %p533_p0 = pnand %p532_p13, %p531_p12 }
  0x18   : > { %p534_p3 = pneg %p533_p0 }
  0x1a   : > { %p539_p7 = pnand %p537_p5, %p534_p3 }
  0x1c   : > { %542 = shalt.err (!%p539_p7)
}
  0x1d   : > { %s543_s8 = scalar_lea.vmem %s160_s24, 64  ;;  %p551_p2 = scmp.lt.s32.totalorder %s160_s24, %s160_s24 }
  0x1e   : > { %p544_p10 = scmp.ne.s32.totalorder %s160_s24, %s543_s8  ;;  %p552_p6 = scmp.lt.s32.totalorder %s543_s8, %s543_s8 }
  0x20   : > { %p546_p9 = pnand %p544_p10, %p532_p13  ;;  %p553_p4 = por %p552_p6, %p551_p2 }
  0x22   : > { %p547_p1 = pneg %p546_p9 }
  0x24   : > { %p554_p8 = pnand %p553_p4, %p547_p1 }
  0x26   : > { %557 = shalt.err (!%p554_p8)
}
  0x27   : > { %462 = dma.hbm_to_vmem [thread:$0]  (!%p791_p11), %s970_s0, 64, %s160_s24, [#allocation3]  }
  0x28   : > { %s558_s23 = scalar_lea.hbm %s971_s1, 64 }
  0x29   : > { %p559_p9 = scmp.ne.s32.totalorder %s971_s1, %s558_s23  ;;  %p565_p4 = scmp.lt.u32.totalorder %s558_s23, %s971_s1 }
  0x2b   : > { %p561_p2 = pnand %p559_p9, %p532_p13 }
  0x2d   : > { %p562_p1 = pneg %p561_p2 }
  0x2f   : > { %p567_p6 = pnand %p565_p4, %p562_p1 }
  0x31   : > { %570 = shalt.err (!%p567_p6)
}
  0x32   : > { %s571_s24 = scalar_lea.vmem %s795_s26, 64  ;;  %p579_p3 = scmp.lt.s32.totalorder %s795_s26, %s795_s26 }
  0x33   : > { %p572_p8 = scmp.ne.s32.totalorder %s795_s26, %s571_s24  ;;  %p580_p5 = scmp.lt.s32.totalorder %s571_s24, %s571_s24 }
  0x35   : > { %p574_p12 = pnand %p572_p8, %p532_p13  ;;  %p581_p7 = por %p580_p5, %p579_p3 }
  0x37   : > { %p575_p0 = pneg %p574_p12 }
  0x39   : > { %p582_p10 = pnand %p581_p7, %p575_p0 }
  0x3b   : > { %585 = shalt.err (!%p582_p10)
}
  0x3c   : > { %465 = dma.hbm_to_vmem [thread:$0]  (!%p791_p11), %s971_s1, 64, %s795_s26, [#allocation6]  }
  0x3d   : > { %s27_s6 = sadd.s32 1, %s702_s16  ;;  %s91_s7 = sadd.s32 1, %s694_s14 }
  0x3e   : > { %p28_p13 = scmp.ge.s32.totalorder %s27_s6, 2  ;;  %p98_p9 = scmp.ne.s32.totalorder %s694_s14, %s690_s13 }
  0x3f   : > { %p99_p2 = scmp.eq.s32.totalorder %s706_s17, 0  ;;  %p476_p1 = scmp.lt.s32.totalorder %s706_s17, 2 }
  0x40   : > { %s998_s6 = smov (%p28_p13, %s27_s6), 0  ;;  %p981_p6 = scmp.eq.s32.totalorder %s763_s18, 1 }
  0x41   : > { %p100_p4 = por %p99_p2, %p98_p9  ;;  %s86_s8 = ssub.s32 %s702_s16, %s998_s6 }
  0x42   : > { %p854_p8 = por %p981_p6, %p98_p9  ;;  %s184_s9 = sand.u32 1, %s706_s17  }
  0x43   : > { %p89_p12 = scmp.eq.s32.totalorder %s86_s8, 0  ;;  %s186_s10 = sand.u32 1, %s694_s14  }
  0x44   : > { %s445_s26 = sshll.u32 %s702_s16, 7  ;;  %s428_s19 = sshll.u32 %s186_s10, 3 }
  0x45   : > { %s864_s11 = scalar_select %p89_p12, %s694_s14, %s91_s7  }
  0x46   : > { %s869_s28 = scalar_lea.hbm %s972_s2, %s445_s26  ;;  %p871_p11 = pnand %p476_p1, %p100_p4 }
  0x47   : > { %s188_s30 = scalar_lea.vmem [#allocation7], %s428_s19  ;;  %s185_s4 = scalar_lea.sflag [#allocation3], %s184_s9 }
  0x48   : > { %s198_s24 = sshll.u32 %s188_s30, 4  ;;  %s586_s5 = scalar_lea.hbm %s869_s28, 128  ;;  %s875_s24 = int_to_ptr.vmem [resolvable:$true] %s198_s24 }
  0x49   : > { %p587_p0 = scmp.ne.s32.totalorder %s869_s28, %s586_s5  ;;  %p588_p3 = pneg %p871_p11 }
  0x4a   : > { %s591_s10 = scalar_lea.hbm %s972_s2, 256  ;;  %p592_p10 = scmp.lt.u32.totalorder %s869_s28, %s972_s2 }
  0x4b   : > { %p589_p5 = pnand %p588_p3, %p587_p0  ;;  %p593_p13 = scmp.lt.u32.totalorder %s591_s10, %s586_s5 }
  0x4c   : > { %p595_p2 = scmp.lt.u32.totalorder %s586_s5, %s869_s28 }
  0x4d   : > { %p590_p7 = pneg %p589_p5  ;;  %p594_p9 = por %p593_p13, %p592_p10 }
  0x4f   : > { %p596_p1 = por %p595_p2, %p594_p9 }
  0x51   : > { %p597_p4 = pnand %p596_p1, %p590_p7 }
  0x53   : > { %600 = shalt.err (!%p597_p4)
}
  0x54   : > { %s601_s9 = scalar_lea.vmem %s875_s24, 128  ;;  %s710_s19 = smov [#allocation7]  }
  0x55   : > { %p602_p6 = scmp.ne.s32.totalorder %s875_s24, %s601_s9  ;;  %s606_s25 = sshll.u32 %s710_s19, 4  ;;  %s607_s25 = int_to_ptr.vmem [resolvable:$false] %s606_s25 }
  0x56   : > { %s608_s30 = scalar_lea.vmem %s607_s25, 256  ;;  %p609_p5 = scmp.lt.s32.totalorder %s875_s24, %s607_s25 }
  0x57   : > { %p604_p12 = pnand %p602_p6, %p588_p3  ;;  %p610_p10 = scmp.lt.s32.totalorder %s608_s30, %s601_s9 }
  0x59   : > { %p605_p0 = pneg %p604_p12  ;;  %p611_p13 = por %p610_p10, %p609_p5 }
  0x5b   : > { %p612_p9 = pnand %p611_p13, %p605_p0 }
  0x5d   : > { %615 = shalt.err (!%p612_p9)
}
  0x5e   : > { %469 = dma.hbm_to_vmem [thread:$0]  (!%p871_p11), %s869_s28, 128, %s875_s24, %s185_s4  }
  0x5f   : > { %p984_p7 = scmp.ne.s32.totalorder %s979_s22, 0 }
  0x60   : > { %p985_p3 = scmp.eq.s32.totalorder (!%p984_p7), %s763_s18, 0 }
  0x61   : > { %207 = sbr.rel (%p984_p7) target bundleno = 139 (0x8b), region = 32 }
  0x68   : > { %669 = dma.done.wait (%p985_p3), [#allocation3], 64   ;;  %p986_p2 = pmov %p985_p3 }
  0x6a   : > { %671 = vsyncadd (%p986_p2), [#allocation3], 4294967232  ;;  %p987_p1 = pmov %p986_p2 }
  0x6c   : > { %673 = dma.done.wait (%p987_p1), [#allocation6], 64   ;;  %p988_p4 = pmov %p987_p1 }
  0x6d   : > { %s217_s29 = sand.u32 1, %s763_s18   ;;  %s219_s28 = sand.u32 1, %s690_s13  }
  0x6e   : > { %675 = vsyncadd (%p988_p4), [#allocation6], 4294967232  ;;  %s434_s24 = sshll.u32 %s219_s28, 3  ;;  %s218_s22 = scalar_lea.sflag [#allocation3], %s217_s29 }
  0x6f   : > { %s221_s4 = scalar_lea.vmem [#allocation7], %s434_s24  ;;  %p989_p11 = scmp.ne.s32.totalorder %s977_s20, 0 }
  0x71   : > { %677 = dma.done.wait (%p989_p11), %s218_s22, 128  }
  0x72   : > { %679 = vsyncadd (%p989_p11), %s218_s22, 4294967168  ;;  %v249_v0 = vld [vmem:[#allocation5] sm:$0xf]  ;;  %v248_v2 = vld [vmem:[#allocation2] sm:$0xf]  ;;  %s243_s18 = scalar_lea.vmem [#allocation8], %s434_s24 }
  0x73   : > { %v436_v1 = vld.sshfl [vmem:[%s221_s4] sm:$0xf pattern:$0x76325410]  ;;  %s315_s5 = sshll.u32 %s243_s18, 4  ;;  %s446_s7 = sshll.u32 %s698_s15, 7  ;;  %s919_s5 = int_to_ptr.vmem [resolvable:$true] %s315_s5 }
  0x74   : > { %v437_v3 = vld.sshfl [vmem:[%s221_s4] sm:$0xf0 pattern:$0x76325410]  ;;  %v261_v4 = vmul.f32 %v436_v1, %v248_v2  ;;  %v285_v6 = vmul.f32 %v436_v1, %v249_v0  ;;  %s924_s10 = scalar_lea.hbm %s973_s3, %s446_s7  ;;  %s299_s26 = scalar_lea.sflag [#allocation4], %s219_s28 }
  0x75   : > { %v270_v5 = vcombine.high %v437_v3, %v437_v3  ;;  %s616_s23 = scalar_lea.vmem %s919_s5, 128  ;;  %s711_s15 = smov [#allocation8]  }
  0x76   : > { %p617_p6 = scmp.ne.s32.totalorder %s919_s5, %s616_s23  ;;  %s620_s9 = sshll.u32 %s711_s15, 4  ;;  %s621_s9 = int_to_ptr.vmem [resolvable:$false] %s620_s9 }
  0x77   : > { %v272_v7 = vmul.f32 %v270_v5, %v249_v0  ;;  %v284_v8 = vmul.f32 %v270_v5, %v248_v2  ;;  %s622_s19 = scalar_lea.vmem %s621_s9, 256  ;;  %p623_p5 = scmp.lt.s32.totalorder %s919_s5, %s621_s9 }
  0x78   : > { %p618_p12 = pnand %p617_p6, %p854_p8  ;;  %p624_p10 = scmp.lt.s32.totalorder %s622_s19, %s616_s23 }
  0x79   : > { %v273_v9 = vsub.f32 %v261_v4, %v272_v7  ;;  %v286_v10 = vadd.f32 %v285_v6, %v284_v8 }
  0x7a   : > { %p619_p0 = pneg %p618_p12  ;;  %p625_p13 = por %p624_p10, %p623_p5 }
  0x7b   : > { %438 = vst.sshfl [vmem:[%s243_s18] sm:$0xf pattern:$0x76325410] %v273_v9  ;;  %v288_v11 = vcombine.low %v286_v10, %v286_v10 }
  0x7c   : > { %p626_p9 = pnand %p625_p13, %p619_p0 }
  0x7d   : > { %439 = vst.sshfl [vmem:[%s243_s18] sm:$0xf0 pattern:$0x76325410] %v288_v11 }
  0x7e   : > { %629 = shalt.err (!%p626_p9)
}
  0x7f   : > { %s630_s25 = scalar_lea.hbm %s924_s10, 128  ;;  %s634_s28 = scalar_lea.hbm %s973_s3, 256 }
  0x80   : > { %p631_p7 = scmp.ne.s32.totalorder %s924_s10, %s630_s25  ;;  %p635_p1 = scmp.lt.u32.totalorder %s924_s10, %s973_s3 }
  0x81   : > { %p636_p4 = scmp.lt.u32.totalorder %s634_s28, %s630_s25  ;;  %p638_p6 = scmp.lt.u32.totalorder %s630_s25, %s924_s10 }
  0x82   : > { %p632_p3 = pnand %p631_p7, %p854_p8 }
  0x83   : > { %p637_p11 = por %p636_p4, %p635_p1 }
  0x84   : > { %p633_p2 = pneg %p632_p3 }
  0x85   : > { %p639_p12 = por %p638_p6, %p637_p11 }
  0x87   : > { %p640_p0 = pnand %p639_p12, %p633_p2 }
  0x89   : > { %643 = shalt.err (!%p640_p0)
}
  0x8a   : > { %457 = dma.vmem_to_hbm [thread:$0]  (%p854_p8), %s919_s5, 128, %s924_s10, %s299_s26  }
  0x8b PF: > { %s327_s4 = sand.u32 1, %s686_s12   ;;  %p990_p5 = scmp.ne.s32.totalorder %s978_s21, 0 }
  0x8c   : > { %p991_p10 = scmp.ge.s32.totalorder %s706_s17, 2  ;;  %s328_s18 = scalar_lea.sflag [#allocation4], %s327_s4 }
  0x8e   : > { %p471_p13 = pnand %p991_p10, %p990_p5 }
  0x90   : > { %681 = dma.done.wait (!%p471_p13), %s328_s18, 128  }
  0x91   : > { %683 = vsyncadd (!%p471_p13), %s328_s18, 4294967168  ;;  %s18_s17 = sadd.s32 1, %s706_s17   ;;  %s992_s12 = smov %s690_s13 }
  0x92   : > { %p15_p9 = scmp.ge.s32.totalorder %s18_s17, 4   ;;  %s993_s13 = smov %s694_s14 }
  0x93   : > { %s994_s14 = smov %s864_s11  ;;  %s995_s15 = smov %s702_s16 }
  0x94   : > { %s996_s16 = smov %s998_s6  ;;  %17 = sbr.rel (!%p15_p9) target bundleno = 6 (0x6), region = 86 }
  0x9b   :  { %333 = vsyncpa [#allocation3], 1 }
  0x9c   :  { %335 = vsyncpa [#allocation3 + $0x1], 1 }
  0x9d   :  { %336 = vsyncpa [#allocation6], 1 }
  0x9e   :  { %337 = vsyncpa [#allocation4], 1 }
  0x9f   :  { %339 = vsyncpa [#allocation4 + $0x1], 1 }

</bundles_post_ra>
